<compile_context>
chip_gen: v7x
topology: tpu7x:2x2x1
jax: 0.10.0
libtpu: 0.0.40
codegen_flags: <defaults>
</compile_context>

<pallas_src>
import functools

import jax
import jax.numpy as jnp
from jax.experimental import pallas as pl
from jax.experimental.pallas import tpu as pltpu

LEAKY_SLOPE = 0.01   # nn.LeakyReLU default
IN_EPS = 1e-5        # nn.InstanceNorm2d default eps (affine=False, biased var)
LANE = 128           # TPU lane width -> channel padding granularity


def _edgeconv_kernel(y_ref, x_ref, w1a_ref, w1x_ref, w2_ref, w3_ref, out_ref,
                     *, n, k):
    # y_ref:  (1, k*N, D) bf16  gathered neighbour features, k-major rows
    # x_ref:  (1, N, D)   bf16  centre-point features
    # w1a:    (D, Cp)     bf16  (y - x) half of conv1      (== W1[:D])
    # w1x:    (D, Cp)     bf16  x-term of conv1            (== W1[D:] - W1[:D])
    # w2,w3:  (Cp, Cp)    bf16
    # out:    (1, N, Cp)  f32
    cp = out_ref.shape[-1]

    def inorm_lrelu(z):
        # InstanceNorm2d (affine=False): per-(batch, channel) stats over the
        # N*k spatial positions.  One pass: E[z], E[z^2]; biased var; all f32.
        mean = jnp.mean(z, axis=0, keepdims=True)
        mean_sq = jnp.mean(z * z, axis=0, keepdims=True)
        var = mean_sq - mean * mean
        zn = (z - mean) * jax.lax.rsqrt(var + IN_EPS)
        return jnp.where(zn >= 0, zn, LEAKY_SLOPE * zn)            # LeakyReLU

    # ---- conv1:  cat([y - x, x]) @ W1  ==  y @ W1a + x @ (W1b - W1a) ----
    yb = y_ref[0]                                                  # (k*N, D) bf16
    xb = x_ref[0]                                                  # (N, D)   bf16
    zy = jnp.dot(yb, w1a_ref[...], preferred_element_type=jnp.float32)  # (k*N, Cp)
    zx = jnp.dot(xb, w1x_ref[...], preferred_element_type=jnp.float32)  # (N, Cp)
    z1 = (zy.reshape(k, n, cp) + zx[None, :, :]).reshape(k * n, cp)
    h = inorm_lrelu(z1)                                            # (k*N, Cp) f32

    # ---- conv2 / conv3: Cp x Cp MXU matmuls (bf16 inputs, f32 accumulate) ----
    h = inorm_lrelu(jnp.dot(h.astype(w2_ref.dtype), w2_ref[...],
                            preferred_element_type=jnp.float32))
    h = inorm_lrelu(jnp.dot(h.astype(w3_ref.dtype), w3_ref[...],
                            preferred_element_type=jnp.float32))

    # ---- max-pool over the k neighbours: k is the leading (major) axis, so
    # this is k-1 elementwise maximums over contiguous (N, Cp) tiles (VPU). ----
    out_ref[0] = jnp.max(h.reshape(k, n, cp), axis=0).astype(out_ref.dtype)


def edge_conv(x, ind, w1, w2, w3):
    """EdgeConv forward.

    x:   (B, N, D) float32 point features.
    ind: (B, N, k) int32 neighbour indices into the flat (B*N) point list
         (exactly as consumed by the PyTorch module: x.view(B*N, D)[ind]).
    w1:  (2D, C) conv1 weight, channels-last (rows 0..D-1 act on (y - x),
         rows D..2D-1 act on x).
    w2, w3: (C, C) conv2 / conv3 weights, channels-last.
    Returns (B, N, C) float32.
    """
    B, N, D = x.shape
    k = ind.shape[2]
    C = w1.shape[1]
    Cp = ((C + LANE - 1) // LANE) * LANE   # lane-dense / MXU-aligned channels

    # ---------------------------- glue (plain JAX) ---------------------------
    # Cast to bf16 up front (native MXU input dtype): the gathered neighbour
    # tensor -- the dominant HBM tensor -- is written/read in half the bytes.
    x16 = x.astype(jnp.bfloat16)
    # k-major gather: y16[b, j, n] = x_flat[ind[b, n, j]].  Only y (width D) is
    # streamed; no cat([y - x, x]) slab is ever materialized.
    idx_kmaj = jnp.transpose(ind, (0, 2, 1))                       # (B, k, N)
    y16 = x16.reshape(B * N, D)[idx_kmaj].reshape(B, k * N, D)     # (B, k*N, D)

    # conv1 split:  cat([y - x, x]) @ W1 == y @ W1a + x @ (W1b - W1a)
    w1a = w1[:D]
    w1x = w1[D:] - w1[:D]
    pad_c = ((0, 0), (0, Cp - C))
    w1a_p = jnp.pad(w1a, pad_c).astype(jnp.bfloat16)               # (D, Cp)
    w1x_p = jnp.pad(w1x, pad_c).astype(jnp.bfloat16)               # (D, Cp)
    w2_p = jnp.pad(w2, ((0, Cp - C), (0, Cp - C))).astype(jnp.bfloat16)
    w3_p = jnp.pad(w3, ((0, Cp - C), (0, Cp - C))).astype(jnp.bfloat16)

    # VMEM budget: double-buffered blocks + weights + live (k*N, Cp) f32 activations.
    est = (2 * (k * N * D * 2 + N * D * 2 + N * Cp * 4)
           + 2 * (2 * D * Cp + 2 * Cp * Cp) * 2
           + 6 * k * N * Cp * 4)
    vmem_limit = int(min(100 * 2 ** 20, max(32 * 2 ** 20, est)))

    kernel = functools.partial(_edgeconv_kernel, n=N, k=k)

    out = pl.pallas_call(
        kernel,
        out_shape=jax.ShapeDtypeStruct((B, N, Cp), jnp.float32),
        grid_spec=pltpu.PrefetchScalarGridSpec(
            num_scalar_prefetch=0,
            grid=(B,),   # one batch element per step; "parallel" -> v7x megacore
            in_specs=[
                pl.BlockSpec((1, k * N, D), lambda b: (b, 0, 0)),
                pl.BlockSpec((1, N, D), lambda b: (b, 0, 0)),
                pl.BlockSpec((D, Cp), lambda b: (0, 0)),
                pl.BlockSpec((D, Cp), lambda b: (0, 0)),
                pl.BlockSpec((Cp, Cp), lambda b: (0, 0)),
                pl.BlockSpec((Cp, Cp), lambda b: (0, 0)),
            ],
            out_specs=pl.BlockSpec((1, N, Cp), lambda b: (b, 0, 0)),
        ),
        compiler_params=pltpu.CompilerParams(
            dimension_semantics=("parallel",),
            vmem_limit_bytes=vmem_limit),
    )(y16, x16, w1a_p, w1x_p, w2_p, w3_p)

    # Drop zero-padded channels (they stay exactly 0 through IN/LeakyReLU).
    return out[:, :, :C]


def _edge_conv_reference(x, ind, w1, w2, w3):
    """Pure-JAX f32 reference that mirrors the PyTorch module exactly."""
    B, N, D = x.shape
    k = ind.shape[2]
    y = x.reshape(B * N, D)[ind.reshape(B, N * k)].reshape(B, N, k, D)
    xc = jnp.broadcast_to(x[:, :, None, :], (B, N, k, D))
    h = jnp.concatenate([y - xc, xc], axis=-1)                     # (B, N, k, 2D)

    def layer(h, w):
        z = jnp.einsum("bnkc,cd->bnkd", h, w)
        mean = jnp.mean(z, axis=(1, 2), keepdims=True)
        var = jnp.mean(jnp.square(z - mean), axis=(1, 2), keepdims=True)
        zn = (z - mean) / jnp.sqrt(var + IN_EPS)
        return jnp.where(zn >= 0, zn, LEAKY_SLOPE * zn)

    h = layer(h, w1)
    h = layer(h, w2)
    h = layer(h, w3)
    return jnp.max(h, axis=2)                                      # (B, N, C)


if __name__ == "__main__":
    # Small, EdgeConv-consistent shapes: B=2 point clouds, N=16 points,
    # D=4 input feature dim, k=8 neighbours, out_channels=32.
    B, N, D, K, C = 2, 16, 4, 8, 32

    key = jax.random.PRNGKey(0)
    kx, ki, k1, k2, k3 = jax.random.split(key, 5)

    x = jax.random.normal(kx, (B, N, D), dtype=jnp.float32)

    # knn-style indices: within-batch neighbours, offset by b*N (flat indexing
    # into x.view(B*N, D), exactly as in the PyTorch forward).
    ind_local = jax.random.randint(ki, (B, N, K), 0, N, dtype=jnp.int32)
    ind = ind_local + (jnp.arange(B, dtype=jnp.int32)[:, None, None] * N)

    # Deterministic synthetic 1x1-conv weights (bias=False), stored as
    # (in_channels, out_channels) for the channels-last matmul.
    w1 = jax.random.normal(k1, (2 * D, C), dtype=jnp.float32) * 0.1
    w2 = jax.random.normal(k2, (C, C), dtype=jnp.float32) * 0.1
    w3 = jax.random.normal(k3, (C, C), dtype=jnp.float32) * 0.1

    out = edge_conv(x, ind, w1, w2, w3)
    jax.block_until_ready(out)
    assert out.shape == (B, N, C), out.shape

    # Parity vs. the f32 reference (kernel deliberately uses bf16 MXU inputs).
    ref = _edge_conv_reference(x, ind, w1, w2, w3)
    max_err = float(jnp.max(jnp.abs(out - ref)))
    assert max_err < 1e-1, f"max abs error {max_err}"

    print("KERNEL_OK")
</pallas_src>

<mosaic_0001>
module attributes {stable_mosaic.version = 11 : i64} {
  func.func @_edgeconv_kernel(%arg0: i32, %arg1: memref<1x128x4xbf16, #tpu.memory_space<vmem>>, %arg2: memref<1x16x4xbf16, #tpu.memory_space<vmem>>, %arg3: memref<4x128xbf16, #tpu.memory_space<vmem>>, %arg4: memref<4x128xbf16, #tpu.memory_space<vmem>>, %arg5: memref<128x128xbf16, #tpu.memory_space<vmem>>, %arg6: memref<128x128xbf16, #tpu.memory_space<vmem>>, %arg7: memref<1x16x128xf32, #tpu.memory_space<vmem>>) attributes {dimension_semantics = [#tpu.dimension_semantics<parallel>], iteration_bounds = array<i64: 2>, scalar_prefetch = 0 : i64, scratch_operands = 0 : i64, tpu.core_type = #tpu.core_type<tc>, window_params = [{transform_indices = @transform_0, window_bounds = array<i64: 1, 128, 4>}, {transform_indices = @transform_1, window_bounds = array<i64: 1, 16, 4>}, {pipeline_mode = #tpu.pipeline_mode<synchronous>, transform_indices = @transform_2, window_bounds = array<i64: 4, 128>}, {pipeline_mode = #tpu.pipeline_mode<synchronous>, transform_indices = @transform_3, window_bounds = array<i64: 4, 128>}, {pipeline_mode = #tpu.pipeline_mode<synchronous>, transform_indices = @transform_4, window_bounds = array<i64: 128, 128>}, {pipeline_mode = #tpu.pipeline_mode<synchronous>, transform_indices = @transform_5, window_bounds = array<i64: 128, 128>}, {transform_indices = @transform_6, window_bounds = array<i64: 1, 16, 128>}]} {
    %c0 = arith.constant 0 : index
    %c0_0 = arith.constant 0 : index
    %c0_1 = arith.constant 0 : index
    %0 = vector.load %arg1[%c0, %c0_0, %c0_1] : memref<1x128x4xbf16, #tpu.memory_space<vmem>>, vector<1x128x4xbf16>
    %1 = vector.shape_cast %0 : vector<1x128x4xbf16> to vector<128x4xbf16>
    %c0_2 = arith.constant 0 : index
    %c0_3 = arith.constant 0 : index
    %c0_4 = arith.constant 0 : index
    %2 = vector.load %arg2[%c0_2, %c0_3, %c0_4] : memref<1x16x4xbf16, #tpu.memory_space<vmem>>, vector<1x16x4xbf16>
    %3 = vector.shape_cast %2 : vector<1x16x4xbf16> to vector<16x4xbf16>
    %c0_5 = arith.constant 0 : index
    %c0_6 = arith.constant 0 : index
    %4 = vector.load %arg3[%c0_5, %c0_6] : memref<4x128xbf16, #tpu.memory_space<vmem>>, vector<4x128xbf16>
    %cst = arith.constant dense<0.000000e+00> : vector<128x128xf32>
    %5 = tpu.matmul %1, %4, %cst {dimension_numbers = #tpu.dot_dimension_numbers<[1], [0], [0], [1], [0, 0, 1, 1], [], []>} : vector<128x4xbf16>, vector<4x128xbf16>, vector<128x128xf32> -> vector<128x128xf32>
    %c0_7 = arith.constant 0 : index
    %c0_8 = arith.constant 0 : index
    %6 = vector.load %arg4[%c0_7, %c0_8] : memref<4x128xbf16, #tpu.memory_space<vmem>>, vector<4x128xbf16>
    %cst_9 = arith.constant dense<0.000000e+00> : vector<16x128xf32>
    %7 = tpu.matmul %3, %6, %cst_9 {dimension_numbers = #tpu.dot_dimension_numbers<[1], [0], [0], [1], [0, 0, 1, 1], [], []>} : vector<16x4xbf16>, vector<4x128xbf16>, vector<16x128xf32> -> vector<16x128xf32>
    %8 = vector.shape_cast %5 : vector<128x128xf32> to vector<8x16x128xf32>
    %9 = vector.shape_cast %7 : vector<16x128xf32> to vector<1x16x128xf32>
    %10 = vector.broadcast %9 : vector<1x16x128xf32> to vector<8x16x128xf32>
    %11 = arith.addf %8, %10 : vector<8x16x128xf32>
    %12 = vector.shape_cast %11 : vector<8x16x128xf32> to vector<128x128xf32>
    %cst_10 = arith.constant dense<0.000000e+00> : vector<128xf32>
    %13 = vector.multi_reduction <add>, %12, %cst_10 [0] : vector<128x128xf32> to vector<128xf32>
    %14 = vector.shape_cast %13 : vector<128xf32> to vector<1x128xf32>
    %cst_11 = arith.constant 1.280000e+02 : f32
    %15 = vector.broadcast %cst_11 : f32 to vector<1x128xf32>
    %16 = arith.divf %14, %15 : vector<1x128xf32>
    %17 = arith.mulf %12, %12 : vector<128x128xf32>
    %cst_12 = arith.constant dense<0.000000e+00> : vector<128xf32>
    %18 = vector.multi_reduction <add>, %17, %cst_12 [0] : vector<128x128xf32> to vector<128xf32>
    %19 = vector.shape_cast %18 : vector<128xf32> to vector<1x128xf32>
    %cst_13 = arith.constant 1.280000e+02 : f32
    %20 = vector.broadcast %cst_13 : f32 to vector<1x128xf32>
    %21 = arith.divf %19, %20 : vector<1x128xf32>
    %22 = arith.mulf %16, %16 : vector<1x128xf32>
    %23 = arith.subf %21, %22 : vector<1x128xf32>
    %24 = vector.broadcast %16 : vector<1x128xf32> to vector<128x128xf32>
    %25 = arith.subf %12, %24 : vector<128x128xf32>
    %cst_14 = arith.constant 9.99999974E-6 : f32
    %26 = vector.broadcast %cst_14 : f32 to vector<1x128xf32>
    %27 = arith.addf %23, %26 : vector<1x128xf32>
    %28 = math.rsqrt %27 : vector<1x128xf32>
    %29 = vector.broadcast %28 : vector<1x128xf32> to vector<128x128xf32>
    %30 = arith.mulf %25, %29 : vector<128x128xf32>
    %cst_15 = arith.constant 0.000000e+00 : f32
    %31 = vector.broadcast %cst_15 : f32 to vector<128x128xf32>
    %32 = arith.cmpf oge, %30, %31 : vector<128x128xf32>
    %cst_16 = arith.constant 0.00999999977 : f32
    %33 = vector.broadcast %cst_16 : f32 to vector<128x128xf32>
    %34 = arith.mulf %33, %30 : vector<128x128xf32>
    %35 = arith.select %32, %30, %34 : vector<128x128xi1>, vector<128x128xf32>
    %36 = arith.truncf %35 : vector<128x128xf32> to vector<128x128xbf16>
    %c0_17 = arith.constant 0 : index
    %c0_18 = arith.constant 0 : index
    %37 = vector.load %arg5[%c0_17, %c0_18] : memref<128x128xbf16, #tpu.memory_space<vmem>>, vector<128x128xbf16>
    %cst_19 = arith.constant dense<0.000000e+00> : vector<128x128xf32>
    %38 = tpu.matmul %36, %37, %cst_19 {dimension_numbers = #tpu.dot_dimension_numbers<[1], [0], [0], [1], [0, 0, 1, 1], [], []>} : vector<128x128xbf16>, vector<128x128xbf16>, vector<128x128xf32> -> vector<128x128xf32>
    %cst_20 = arith.constant dense<0.000000e+00> : vector<128xf32>
    %39 = vector.multi_reduction <add>, %38, %cst_20 [0] : vector<128x128xf32> to vector<128xf32>
    %40 = vector.shape_cast %39 : vector<128xf32> to vector<1x128xf32>
    %cst_21 = arith.constant 1.280000e+02 : f32
    %41 = vector.broadcast %cst_21 : f32 to vector<1x128xf32>
    %42 = arith.divf %40, %41 : vector<1x128xf32>
    %43 = arith.mulf %38, %38 : vector<128x128xf32>
    %cst_22 = arith.constant dense<0.000000e+00> : vector<128xf32>
    %44 = vector.multi_reduction <add>, %43, %cst_22 [0] : vector<128x128xf32> to vector<128xf32>
    %45 = vector.shape_cast %44 : vector<128xf32> to vector<1x128xf32>
    %cst_23 = arith.constant 1.280000e+02 : f32
    %46 = vector.broadcast %cst_23 : f32 to vector<1x128xf32>
    %47 = arith.divf %45, %46 : vector<1x128xf32>
    %48 = arith.mulf %42, %42 : vector<1x128xf32>
    %49 = arith.subf %47, %48 : vector<1x128xf32>
    %50 = vector.broadcast %42 : vector<1x128xf32> to vector<128x128xf32>
    %51 = arith.subf %38, %50 : vector<128x128xf32>
    %cst_24 = arith.constant 9.99999974E-6 : f32
    %52 = vector.broadcast %cst_24 : f32 to vector<1x128xf32>
    %53 = arith.addf %49, %52 : vector<1x128xf32>
    %54 = math.rsqrt %53 : vector<1x128xf32>
    %55 = vector.broadcast %54 : vector<1x128xf32> to vector<128x128xf32>
    %56 = arith.mulf %51, %55 : vector<128x128xf32>
    %cst_25 = arith.constant 0.000000e+00 : f32
    %57 = vector.broadcast %cst_25 : f32 to vector<128x128xf32>
    %58 = arith.cmpf oge, %56, %57 : vector<128x128xf32>
    %cst_26 = arith.constant 0.00999999977 : f32
    %59 = vector.broadcast %cst_26 : f32 to vector<128x128xf32>
    %60 = arith.mulf %59, %56 : vector<128x128xf32>
    %61 = arith.select %58, %56, %60 : vector<128x128xi1>, vector<128x128xf32>
    %62 = arith.truncf %61 : vector<128x128xf32> to vector<128x128xbf16>
    %c0_27 = arith.constant 0 : index
    %c0_28 = arith.constant 0 : index
    %63 = vector.load %arg6[%c0_27, %c0_28] : memref<128x128xbf16, #tpu.memory_space<vmem>>, vector<128x128xbf16>
    %cst_29 = arith.constant dense<0.000000e+00> : vector<128x128xf32>
    %64 = tpu.matmul %62, %63, %cst_29 {dimension_numbers = #tpu.dot_dimension_numbers<[1], [0], [0], [1], [0, 0, 1, 1], [], []>} : vector<128x128xbf16>, vector<128x128xbf16>, vector<128x128xf32> -> vector<128x128xf32>
    %cst_30 = arith.constant dense<0.000000e+00> : vector<128xf32>
    %65 = vector.multi_reduction <add>, %64, %cst_30 [0] : vector<128x128xf32> to vector<128xf32>
    %66 = vector.shape_cast %65 : vector<128xf32> to vector<1x128xf32>
    %cst_31 = arith.constant 1.280000e+02 : f32
    %67 = vector.broadcast %cst_31 : f32 to vector<1x128xf32>
    %68 = arith.divf %66, %67 : vector<1x128xf32>
    %69 = arith.mulf %64, %64 : vector<128x128xf32>
    %cst_32 = arith.constant dense<0.000000e+00> : vector<128xf32>
    %70 = vector.multi_reduction <add>, %69, %cst_32 [0] : vector<128x128xf32> to vector<128xf32>
    %71 = vector.shape_cast %70 : vector<128xf32> to vector<1x128xf32>
    %cst_33 = arith.constant 1.280000e+02 : f32
    %72 = vector.broadcast %cst_33 : f32 to vector<1x128xf32>
    %73 = arith.divf %71, %72 : vector<1x128xf32>
    %74 = arith.mulf %68, %68 : vector<1x128xf32>
    %75 = arith.subf %73, %74 : vector<1x128xf32>
    %76 = vector.broadcast %68 : vector<1x128xf32> to vector<128x128xf32>
    %77 = arith.subf %64, %76 : vector<128x128xf32>
    %cst_34 = arith.constant 9.99999974E-6 : f32
    %78 = vector.broadcast %cst_34 : f32 to vector<1x128xf32>
    %79 = arith.addf %75, %78 : vector<1x128xf32>
    %80 = math.rsqrt %79 : vector<1x128xf32>
    %81 = vector.broadcast %80 : vector<1x128xf32> to vector<128x128xf32>
    %82 = arith.mulf %77, %81 : vector<128x128xf32>
    %cst_35 = arith.constant 0.000000e+00 : f32
    %83 = vector.broadcast %cst_35 : f32 to vector<128x128xf32>
    %84 = arith.cmpf oge, %82, %83 : vector<128x128xf32>
    %cst_36 = arith.constant 0.00999999977 : f32
    %85 = vector.broadcast %cst_36 : f32 to vector<128x128xf32>
    %86 = arith.mulf %85, %82 : vector<128x128xf32>
    %87 = arith.select %84, %82, %86 : vector<128x128xi1>, vector<128x128xf32>
    %88 = vector.shape_cast %87 : vector<128x128xf32> to vector<8x16x128xf32>
    %cst_37 = arith.constant dense<0xFF800000> : vector<16x128xf32>
    %89 = vector.multi_reduction <maximumf>, %88, %cst_37 [0] : vector<8x16x128xf32> to vector<16x128xf32>
    %c0_38 = arith.constant 0 : index
    %c0_39 = arith.constant 0 : index
    %c0_40 = arith.constant 0 : index
    %90 = vector.load %arg7[%c0_38, %c0_39, %c0_40] : memref<1x16x128xf32, #tpu.memory_space<vmem>>, vector<1x16x128xf32>
    %91 = vector.shape_cast %90 : vector<1x16x128xf32> to vector<16x128xf32>
    %92 = vector.shape_cast %89 : vector<16x128xf32> to vector<1x16x128xf32>
    tpu.vector_store %arg7[%c0_38, %c0_39, %c0_40], %92 {strides = array<i32>} : memref<1x16x128xf32, #tpu.memory_space<vmem>>, vector<1x16x128xf32>,
    return
  }
  func.func @transform_0(%arg0: i32) -> (i32, i32, i32) {
    %c0_i32 = arith.constant 0 : i32
    %c0_i32_0 = arith.constant 0 : i32
    %c0_i32_1 = arith.constant 0 : i32
    return %arg0, %c0_i32, %c0_i32_0 : i32, i32, i32
  }
  func.func @transform_1(%arg0: i32) -> (i32, i32, i32) {
    %c0_i32 = arith.constant 0 : i32
    %c0_i32_0 = arith.constant 0 : i32
    %c0_i32_1 = arith.constant 0 : i32
    return %arg0, %c0_i32, %c0_i32_0 : i32, i32, i32
  }
  func.func @transform_2(%arg0: i32) -> (i32, i32) {
    %c0_i32 = arith.constant 0 : i32
    %c0_i32_0 = arith.constant 0 : i32
    %c0_i32_1 = arith.constant 0 : i32
    return %c0_i32, %c0_i32_0 : i32, i32
  }
  func.func @transform_3(%arg0: i32) -> (i32, i32) {
    %c0_i32 = arith.constant 0 : i32
    %c0_i32_0 = arith.constant 0 : i32
    %c0_i32_1 = arith.constant 0 : i32
    return %c0_i32, %c0_i32_0 : i32, i32
  }
  func.func @transform_4(%arg0: i32) -> (i32, i32) {
    %c0_i32 = arith.constant 0 : i32
    %c0_i32_0 = arith.constant 0 : i32
    %c0_i32_1 = arith.constant 0 : i32
    return %c0_i32, %c0_i32_0 : i32, i32
  }
  func.func @transform_5(%arg0: i32) -> (i32, i32) {
    %c0_i32 = arith.constant 0 : i32
    %c0_i32_0 = arith.constant 0 : i32
    %c0_i32_1 = arith.constant 0 : i32
    return %c0_i32, %c0_i32_0 : i32, i32
  }
  func.func @transform_6(%arg0: i32) -> (i32, i32, i32) {
    %c0_i32 = arith.constant 0 : i32
    %c0_i32_0 = arith.constant 0 : i32
    %c0_i32_1 = arith.constant 0 : i32
    return %arg0, %c0_i32, %c0_i32_0 : i32, i32, i32
  }
}

</mosaic_0001>

<bundles_post_ra>
// kernel: tpu_custom_call.1
= control target key start
LH: loop header
LB: loop body
LE: loop exit
PB: predicated region body
PF: predicated region fallthrough
CT: control target
= control target key end

     0   :  { %11 = vsyncpa [#allocation3], 0  ;;  %s2347_s0 = inlined_call_operand.vmem [shape: bf16[2,128,4], index: 0, kind: input, shape index: {}]   ;;  %s2348_s1 = inlined_call_operand.vmem [shape: bf16[2,16,4], index: 1, kind: input, shape index: {}]   ;;  %s2349_s2 = inlined_call_operand.vmem [shape: bf16[4,128], index: 2, kind: input, shape index: {}]   ;;  %s2350_s3 = inlined_call_operand.vmem [shape: bf16[4,128], index: 3, kind: input, shape index: {}]   ;;  %s2351_s4 = inlined_call_operand.vmem [shape: bf16[128,128], index: 4, kind: input, shape index: {}]   ;;  %s2352_s5 = inlined_call_operand.vmem [shape: bf16[128,128], index: 5, kind: input, shape index: {}]   ;;  %s2353_s6 = inlined_call_operand.hbm [shape: f32[2,16,128], index: 6, kind: output, shape index: {}]  }
   0x1   :  { %13 = vsyncpa [#allocation3 + $0x1], 0  ;;  %s1761_s21 = smov 0   ;;  %s1763_s22 = smov 0  }
   0x2   :  { %s1765_s23 = smov 0   ;;  %s1767_s24 = smov 0  }
   0x3 LB: > { %s1782_s25 = sadd.s32 4294967295, %s1719_s24   ;;  %s1400_s26 = sadd.s32 4294967294, %s1719_s24   ;;  %s1719_s24 = sphi %s1767_s24, %s2359_s24   ;;  %s1715_s23 = sphi %s1765_s23, %s2358_s23   ;;  %s1711_s22 = sphi %s1763_s22, %s2357_s22   ;;  %s1707_s21 = sphi %s1761_s21, %s2356_s21  }
   0x4   : > { %s1786_s27 = sadd.s32 1, %s1719_s24   ;;  %s162_s28 = sadd.s32 1, %s1715_s23 }
   0x5   : > { %s159_s29 = ssub.s32 %s1719_s24, %s1786_s27  ;;  %p172_p0 = scmp.ne.s32.totalorder %s1715_s23, %s1711_s22 }
   0x6   : > { %p160_p1 = scmp.eq.s32.totalorder %s159_s29, 0  ;;  %p173_p2 = scmp.eq.s32.totalorder %s1782_s25, 1 }
   0x7   : > { %p178_p3 = scmp.ne.s32.totalorder %s1711_s22, %s1707_s21  ;;  %p179_p4 = scmp.eq.s32.totalorder %s1400_s26, 1 }
   0x8   : > { %s1797_s30 = scalar_select %p160_p1, %s1715_s23, %s162_s28  }
   0x9   : > { %p1799_p5 = por %p173_p2, %p172_p0  ;;  %p1803_p6 = por %p179_p4, %p178_p3 }
   0xa   : > { %p1403_p7 = scmp.ge.s32.totalorder %s1719_s24, 1  ;;  %p225_p8 = scmp.lt.s32.totalorder %s1719_s24, 3 }
   0xc   : > { %p226_p9 = pnand %p1403_p7, %p225_p8 }
   0xd   : > { %v289_v0 = vld [vmem:[%s2349_s2] sm:$0x3] (!%p226_p9)  ;;  %vm355_vm0 = vcmask (!%p226_p9), 1041408   ;;  %v1721_v2 = vmov (!%p226_p9), 0.0   ;;  %p260_p10 = scmp.lt.s32.totalorder (!%p226_p9), %s1782_s25, 1  ;;  %vm1722_vm1 = vmmov (!%p226_p9), 0  }
   0xe   : > { %229 = sbr.rel (%p226_p9) target bundleno = 914 (0x392), region = 44  ;;  %v456_v1 = vld [vmem:[%s2350_s3] sm:$0x3] (!%p226_p9)  ;;  %1512 = vmatprep.subr.bf16.mxu1 (!%p226_p9), %v1721_v2  ;;  %1582 = vmatprep.subr.msk.bf16.mxu0 (!%p226_p9), %vm355_vm0, %v289_v0  ;;  %v357_v4 = vsel (!%p226_p9), %vm355_vm0, %v289_v0, 0  ;;  %vm330_vm2 = vcmask (!%p226_p9), 31744   ;;  %v1636_v15 = vld [vmem:[%s2351_s4 + $0x8] sm:$0xff] (!%p226_p9)  }
   0xf   : > { %v466_v3 = vsel (!%p226_p9), %vm355_vm0, %v456_v1, 0  ;;  %1495 = vmatpush3.bf16.msra.mxu0 (!%p226_p9), %v357_v4  ;;  %1514 = vmatprep.mubr.msk.bf16.mxu1 (!%p226_p9), %vm1722_vm1, %v1721_v2  ;;  %v1635_v14 = vld [vmem:[%s2351_s4] sm:$0xff] (!%p226_p9)   ;;  %v1637_v16 = vld [vmem:[%s2351_s4 + $0x10] sm:$0xff] (!%p226_p9)   ;;  %v1638_v17 = vld [vmem:[%s2351_s4 + $0x18] sm:$0xff] (!%p226_p9)   ;;  %s257_s9 = sand.u32 (!%p226_p9), 1, %s1711_s22   ;;  %s1450_s12 = sshll.u32 (!%p226_p9), %s1782_s25, 8 }
  0x10   : > { %1513 = vmatpush3.bf16.msra.mxu1 (!%p226_p9), %v466_v3  ;;  %1518 = vmatprep.subr.bf16.mxu0 (!%p226_p9), %v1635_v14  ;;  %v1639_v18 = vld [vmem:[%s2351_s4 + $0x20] sm:$0xff] (!%p226_p9)   ;;  %v1640_v19 = vld [vmem:[%s2351_s4 + $0x28] sm:$0xff] (!%p226_p9)   ;;  %v1641_v20 = vld [vmem:[%s2351_s4 + $0x30] sm:$0xff] (!%p226_p9)   ;;  %s2291_s10 = sshll.u32 (!%p226_p9), %s257_s9, 4  ;;  %s2300_s16 = scalar_lea.hbm (!%p226_p9), %s2353_s6, %s1450_s12 }
  0x11   : > { %v1642_v21 = vld [vmem:[%s2351_s4 + $0x38] sm:$0xff] (!%p226_p9)   ;;  %s259_s11 = scalar_lea.vmem (!%p226_p9), [#allocation2], %s2291_s10  ;;  %s2306_s17 = scalar_lea.sflag (!%p226_p9), [#allocation3], %s257_s9 }
  0x15   : > { %s261_s13 = scalar_select %p260_p10, %s1782_s25, 1 }
  0x17   : > { %s1448_s14 = sshll.u32 %s261_s13, 6  ;;  %s1449_s15 = sshll.u32 %s261_s13, 3 }
  0x18   : > { %s264_s18 = scalar_lea.vmem %s2347_s0, %s1448_s14  ;;  %s269_s26 = scalar_lea.vmem %s2348_s1, %s1449_s15 }
  0x19   : > { %v1626_v5 = vld [vmem:[%s264_s18] sm:$0xff]   ;;  %v1628_v7 = vld [vmem:[%s264_s18 + $0x8] sm:$0xff]   ;;  %v1629_v8 = vld [vmem:[%s264_s18 + $0x10] sm:$0xff]   ;;  %s1326_s13 = sshll.u32 %s259_s11, 4  ;;  %s2302_s13 = int_to_ptr.vmem [resolvable:$true] %s1326_s13 }
  0x1a   : > { %v1627_v6 = vld [vmem:[%s269_s26] sm:$0xff]   ;;  %1496 = vmatprep.mubr.msk.bf16.mxu0 %vm330_vm2, %v1626_v5  ;;  %v1630_v9 = vld [vmem:[%s264_s18 + $0x18] sm:$0xff]   ;;  %v1632_v11 = vld [vmem:[%s264_s18 + $0x28] sm:$0xff]   ;;  %s1657_s25 = scalar_lea.vmem %s2302_s13, 256 }
  0x1b   : > { %1515 = vmatmul.mubr.msk.bf16.vlgmr.msra.gmra.mrb[0].mxu1 %vm330_vm2, %v1627_v6  ;;  %1497 = vmatmul.mubr.msk.bf16.vlgmr.msra.gmra.mrb[0].mxu0 %vm330_vm2, %v1628_v7  ;;  %v1631_v10 = vld [vmem:[%s264_s18 + $0x20] sm:$0xff]   ;;  %v1633_v12 = vld [vmem:[%s264_s18 + $0x30] sm:$0xff]   ;;  %v1634_v13 = vld [vmem:[%s264_s18 + $0x38] sm:$0xff]   ;;  %p1658_p11 = scmp.ne.s32.totalorder %s2302_s13, %s1657_s25  ;;  %s1723_s18 = smov [#allocation2]  }
  0x1c   : > { %1500 = vmatprep.mubr.msk.bf16.mxu0 %vm330_vm2, %v1629_v8  ;;  %1519 = vmatpush3.bf16.msra.mxu0 %v1635_v14  ;;  %s1661_s19 = sshll.u32 %s1723_s18, 4  ;;  %s1662_s19 = int_to_ptr.vmem [resolvable:$false] %s1661_s19 }
  0x1d   : > { %1520 = vmatprep.subr.bf16.mxu0 %v1636_v15  ;;  %p1659_p12 = pnand %p1658_p11, %p1799_p5  ;;  %s1663_s20 = scalar_lea.vmem %s1662_s19, 512 }
  0x1e   : > { %p1664_p0 = scmp.lt.s32.totalorder %s2302_s13, %s1662_s19  ;;  %p1665_p1 = scmp.lt.s32.totalorder %s1663_s20, %s1657_s25 }
  0x1f   : > { %p1660_p13 = pneg %p1659_p12 }
  0x20   : > { %1521 = vmatpush3.bf16.msra.mxu0 %v1636_v15  ;;  %p1666_p2 = por %p1665_p1, %p1664_p0 }
  0x21   : > { %1522 = vmatprep.subr.bf16.mxu0 %v1637_v16 }
  0x22   : > { %p1667_p3 = pnand %p1666_p2, %p1660_p13 }
  0x23   : > { %1501 = vmatmul.mubr.msk.bf16.gmra.mrb[4].mxu0 %vm330_vm2, %v1630_v9 }
  0x24   : > { %1504 = vmatprep.mubr.msk.bf16.mxu0 %vm330_vm2, %v1631_v10  ;;  %1523 = vmatpush3.bf16.msra.mxu0 %v1637_v16 }
  0x25   : > { %1524 = vmatprep.subr.bf16.mxu0 %v1638_v17 }
  0x28   : > { %1525 = vmatpush3.bf16.msra.mxu0 %v1638_v17 }
  0x29   : > { %1526 = vmatprep.subr.bf16.mxu0 %v1639_v18 }
  0x2b   : > { %1505 = vmatmul.mubr.msk.bf16.gmra.mrb[8].mxu0 %vm330_vm2, %v1632_v11 }
  0x2c   : > { %1508 = vmatprep.mubr.msk.bf16.mxu0 %vm330_vm2, %v1633_v12  ;;  %1527 = vmatpush3.bf16.msra.mxu0 %v1639_v18 }
  0x2d   : > { %1528 = vmatprep.subr.bf16.mxu0 %v1640_v19 }
  0x30   : > { %1529 = vmatpush3.bf16.msra.mxu0 %v1640_v19 }
  0x31   : > { %1530 = vmatprep.subr.bf16.mxu0 %v1641_v20 }
  0x33   : > { %1509 = vmatmul.mubr.msk.bf16.gmra.mrb[12].mxu0 %vm330_vm2, %v1634_v13 }
  0x34   : > { %1531 = vmatpush3.bf16.msra.mxu0 %v1641_v20 }
  0x35   : > { %1532 = vmatprep.subr.bf16.mxu0 %v1642_v21 }
  0x38   : > { %1533 = vmatpush3.bf16.msra.mxu0 %v1642_v21 }
  0xee   : > { %v1856_v22 = vpop.f32.mrb[0].mxu1  ;;  %v1498_v23 = vpop.f32.mrb[0].mxu0 }
  0xef   : > { %v1516_v24 = vpop.f32.mrb[1].mxu1  ;;  %v1859_v25 = vadd.f32 %v1498_v23, %v1856_v22  ;;  %v393_v26 = vpop.f32.mrb[1].mxu0 }
  0xf0   : > { %v1861_v27 = vpop.f32.mrb[2].mxu1  ;;  %v1864_v28 = vadd.f32 %v1856_v22, %v393_v26  ;;  %v1499_v29 = vpop.f32.mrb[2].mxu0 }
  0xf1   : > { %v1517_v30 = vpop.f32.mrb[3].mxu1  ;;  %v1867_v31 = vadd.f32 %v1499_v29, %v1861_v27  ;;  %v396_v32 = vpop.f32.mrb[3].mxu0  ;;  %v550_v37 = vmul.f32 %v1859_v25, %v1859_v25 }
  0xf2   : > { %v1870_v33 = vadd.f32 %v1861_v27, %v396_v32  ;;  %v548_v34 = vmul.f32 %v1864_v28, %v1864_v28 }
  0xf3   : > { %v551_v43 = vmul.f32 %v1867_v31, %v1867_v31 }
  0xf4   : > { %v525_v35 = vadd.f32 %v1870_v33, %v1864_v28  ;;  %v549_v36 = vmul.f32 %v1870_v33, %v1870_v33 }
  0xf6   : > { %v526_v38 = vadd.f32 %v525_v35, %v1859_v25  ;;  %v564_v39 = vadd.f32 %v549_v36, %v548_v34  ;;  %v1502_v40 = vpop.f32.mrb[4].mxu0 }
  0xf7   : > { %v1882_v41 = vadd.f32 %v1502_v40, %v1856_v22  ;;  %v409_v42 = vpop.f32.mrb[5].mxu0 }
  0xf8   : > { %v565_v44 = vadd.f32 %v564_v39, %v550_v37  ;;  %v1887_v45 = vadd.f32 %v1856_v22, %v409_v42  ;;  %v527_v46 = vadd.f32 %v526_v38, %v1867_v31  ;;  %v1503_v47 = vpop.f32.mrb[6].mxu0 }
  0xf9   : > { %v1891_v48 = vadd.f32 %v1503_v47, %v1861_v27  ;;  %v412_v49 = vpop.f32.mrb[7].mxu0  ;;  %v554_v57 = vmul.f32 %v1882_v41, %v1882_v41 }
  0xfa   : > { %v528_v50 = vadd.f32 %v527_v46, %v1887_v45  ;;  %v552_v51 = vmul.f32 %v1887_v45, %v1887_v45  ;;  %v566_v52 = vadd.f32 %v565_v44, %v551_v43  ;;  %v1897_v53 = vadd.f32 %v1861_v27, %v412_v49 }
  0xfb   : > { %v555_v63 = vmul.f32 %v1891_v48, %v1891_v48 }
  0xfc   : > { %v567_v54 = vadd.f32 %v566_v52, %v552_v51  ;;  %v529_v55 = vadd.f32 %v528_v50, %v1897_v53  ;;  %v553_v56 = vmul.f32 %v1897_v53, %v1897_v53 }
  0xfe   : > { %v530_v58 = vadd.f32 %v529_v55, %v1882_v41  ;;  %v568_v59 = vadd.f32 %v567_v54, %v553_v56  ;;  %v1506_v60 = vpop.f32.mrb[8].mxu0 }
  0xff   : > { %v1906_v61 = vadd.f32 %v1506_v60, %v1856_v22  ;;  %v425_v62 = vpop.f32.mrb[9].mxu0 }
 0x100   : > { %v569_v0 = vadd.f32 %v568_v59, %v554_v57  ;;  %v1911_v1 = vadd.f32 %v1856_v22, %v425_v62  ;;  %v531_v2 = vadd.f32 %v530_v58, %v1891_v48  ;;  %v1507_v3 = vpop.f32.mrb[10].mxu0 }
 0x101   : > { %v1915_v4 = vadd.f32 %v1507_v3, %v1861_v27  ;;  %v428_v5 = vpop.f32.mrb[11].mxu0  ;;  %v558_v13 = vmul.f32 %v1906_v61, %v1906_v61 }
 0x102   : > { %v532_v6 = vadd.f32 %v531_v2, %v1911_v1  ;;  %v556_v7 = vmul.f32 %v1911_v1, %v1911_v1  ;;  %v570_v8 = vadd.f32 %v569_v0, %v555_v63  ;;  %v1921_v9 = vadd.f32 %v1861_v27, %v428_v5 }
 0x103   : > { %v559_v19 = vmul.f32 %v1915_v4, %v1915_v4 }
 0x104   : > { %v571_v10 = vadd.f32 %v570_v8, %v556_v7  ;;  %v533_v11 = vadd.f32 %v532_v6, %v1921_v9  ;;  %v557_v12 = vmul.f32 %v1921_v9, %v1921_v9 }
 0x106   : > { %v534_v14 = vadd.f32 %v533_v11, %v1906_v61  ;;  %v572_v15 = vadd.f32 %v571_v10, %v557_v12  ;;  %v1510_v16 = vpop.f32.mrb[12].mxu0 }
 0x107   : > { %v1930_v17 = vadd.f32 %v1510_v16, %v1856_v22  ;;  %v441_v18 = vpop.f32.mrb[13].mxu0 }
 0x108   : > { %v573_v20 = vadd.f32 %v572_v15, %v558_v13  ;;  %v1935_v21 = vadd.f32 %v1856_v22, %v441_v18  ;;  %v535_v23 = vadd.f32 %v534_v14, %v1915_v4  ;;  %v1511_v24 = vpop.f32.mrb[14].mxu0 }
 0x109   : > { %v1939_v26 = vadd.f32 %v1511_v24, %v1861_v27  ;;  %v444_v29 = vpop.f32.mrb[15].mxu0  ;;  %v562_v22 = vmul.f32 %v1930_v17, %v1930_v17 }
 0x10a   : > { %v536_v30 = vadd.f32 %v535_v23, %v1935_v21  ;;  %v560_v32 = vmul.f32 %v1935_v21, %v1935_v21  ;;  %v574_v34 = vadd.f32 %v573_v20, %v559_v19  ;;  %v522_v35 = vadd.f32 %v1861_v27, %v444_v29 }
 0x10b   : > { %v563_v42 = vmul.f32 %v1939_v26, %v1939_v26 }
 0x10c   : > { %v575_v36 = vadd.f32 %v574_v34, %v560_v32  ;;  %v537_v37 = vadd.f32 %v536_v30, %v522_v35  ;;  %v561_v38 = vmul.f32 %v522_v35, %v522_v35 }
 0x10e   : > { %v538_v39 = vadd.f32 %v537_v37, %v1930_v17  ;;  %v576_v40 = vadd.f32 %v575_v36, %v561_v38 }
 0x110   : > { %v539_v43 = vadd.f32 %v538_v39, %v1939_v26  ;;  %v577_v44 = vadd.f32 %v576_v40, %v562_v22 }
 0x112   : > { %v540_v46 = vrot.slane %v539_v43, 4  ;;  %v578_v47 = vadd.f32 %v577_v44, %v563_v42 }
 0x114   : > { %v541_v49 = vadd.f32 %v540_v46, %v539_v43  ;;  %v579_v50 = vrot.slane %v578_v47, 4 }
 0x116   : > { %v542_v27 = vrot.slane %v541_v49, 2  ;;  %v580_v51 = vadd.f32 %v579_v50, %v578_v47 }
 0x118   : > { %v543_v52 = vadd.f32 %v542_v27, %v541_v49  ;;  %v581_v54 = vrot.slane %v580_v51, 2 }
 0x11a   : > { %v544_v55 = vrot.slane %v543_v52, 1  ;;  %v582_v56 = vadd.f32 %v581_v54, %v580_v51 }
 0x11c   : > { %v545_v57 = vadd.f32 %v544_v55, %v543_v52  ;;  %v583_v58 = vrot.slane %v582_v56, 1 }
 0x11e   : > { %v1951_v59 = vmul.f32 0.0078125, %v545_v57  ;;  %v584_v60 = vadd.f32 %v583_v58, %v582_v56 }
 0x120   : > { %v585_v62 = vmul.f32 0.0078125, %v584_v60  ;;  %v586_v63 = vmul.f32 %v1951_v59, %v1951_v59  ;;  %v601_v0 = vsub.f32 %v522_v35, %v1951_v59  ;;  %v588_v2 = vsub.f32 %v1864_v28, %v1951_v59 }
 0x121   : > { %v589_v3 = vsub.f32 %v1870_v33, %v1951_v59  ;;  %v590_v5 = vsub.f32 %v1859_v25, %v1951_v59  ;;  %v591_v6 = vsub.f32 %v1867_v31, %v1951_v59  ;;  %v592_v7 = vsub.f32 %v1887_v45, %v1951_v59 }
 0x122   : > { %v587_v8 = vsub.f32 %v585_v62, %v586_v63  ;;  %v593_v10 = vsub.f32 %v1897_v53, %v1951_v59  ;;  %v594_v11 = vsub.f32 %v1882_v41, %v1951_v59  ;;  %v595_v28 = vsub.f32 %v1891_v48, %v1951_v59 }
 0x123   : > { %v596_v33 = vsub.f32 %v1911_v1, %v1951_v59  ;;  %v597_v25 = vsub.f32 %v1921_v9, %v1951_v59  ;;  %v598_v31 = vsub.f32 %v1906_v61, %v1951_v59  ;;  %v599_v45 = vsub.f32 %v1915_v4, %v1951_v59 }
 0x124   : > { %v604_v12 = vadd.f32 1e-05, %v587_v8  ;;  %v600_v53 = vsub.f32 %v1935_v21, %v1951_v59  ;;  %v602_v41 = vsub.f32 %v1930_v17, %v1951_v59  ;;  %v603_v48 = vsub.f32 %v1939_v26, %v1951_v59  ;;  %v1643_v26 = vld [vmem:[%s2352_s5] sm:$0xff]   ;;  %v1644_v59 = vld [vmem:[%s2352_s5 + $0x8] sm:$0xff]  }
 0x125   : > { %1550 = vmatprep.subr.bf16.mxu1 %v1643_v26 }
 0x126   : > { %1651 = vrsqrt.f32 %v604_v12  ;;  %1551 = vmatpush3.bf16.msra.mxu1 %v1643_v26  ;;  %v1646_v12 = vld [vmem:[%s2352_s5 + $0x18] sm:$0xff]  }
 0x127   : > { %1552 = vmatprep.subr.bf16.mxu1 %v1644_v59 }
 0x12a   : > { %1553 = vmatpush3.bf16.msra.mxu1 %v1644_v59 }
 0x130   : > { %v1986_v1 = vpop.eup %1651 }
 0x131   : > { %v1989_v9 = vmul.f32 %v1986_v1, %v601_v0  ;;  %v606_v61 = vmul.f32 %v1986_v1, %v588_v2  ;;  %v607_v4 = vmul.f32 %v1986_v1, %v589_v3  ;;  %v608_v13 = vmul.f32 %v1986_v1, %v590_v5 }
 0x132   : > { %v609_v14 = vmul.f32 %v1986_v1, %v591_v6  ;;  %v610_v15 = vmul.f32 %v1986_v1, %v592_v7  ;;  %v611_v16 = vmul.f32 %v1986_v1, %v593_v10  ;;  %v612_v18 = vmul.f32 %v1986_v1, %v594_v11 }
 0x133   : > { %vm622_vm3 = vcmp.ge.f32.partialorder %v606_v61, 0.0  ;;  %vm623_vm4 = vcmp.ge.f32.partialorder %v607_v4, 0.0  ;;  %v638_v19 = vmul.f32 0.01, %v606_v61  ;;  %v639_v20 = vmul.f32 0.01, %v607_v4 }
 0x134   : > { %vm624_vm5 = vcmp.ge.f32.partialorder %v608_v13, 0.0  ;;  %vm625_vm6 = vcmp.ge.f32.partialorder %v609_v14, 0.0  ;;  %v640_v21 = vmul.f32 0.01, %v608_v13  ;;  %v641_v23 = vmul.f32 0.01, %v609_v14 }
 0x135   : > { %v654_v24 = vsel %vm622_vm3, %v606_v61, %v638_v19  ;;  %v655_v29 = vsel %vm623_vm4, %v607_v4, %v639_v20  ;;  %vm626_vm7 = vcmp.ge.f32.partialorder %v610_v15, 0.0  ;;  %vm627_vm8 = vcmp.ge.f32.partialorder %v611_v16, 0.0 }
 0x136   : > { %v670_v30 = vpack.c.bf16 %v655_v29, %v654_v24  ;;  %v656_v32 = vsel %vm624_vm5, %v608_v13, %v640_v21  ;;  %v657_v34 = vsel %vm625_vm6, %v609_v14, %v641_v23  ;;  %v642_v35 = vmul.f32 0.01, %v610_v15 }
 0x137   : > { %v671_v36 = vpack.c.bf16 %v657_v34, %v656_v32  ;;  %v643_v37 = vmul.f32 0.01, %v611_v16  ;;  %v613_v38 = vmul.f32 %v1986_v1, %v595_v28  ;;  %vm628_vm9 = vcmp.ge.f32.partialorder %v612_v18, 0.0 }
 0x138   : > { %1534 = vmatprep.mubr.bf16.mxu0 %v670_v30  ;;  %v658_v22 = vsel %vm626_vm7, %v610_v15, %v642_v35  ;;  %v644_v39 = vmul.f32 0.01, %v612_v18  ;;  %v614_v40 = vmul.f32 %v1986_v1, %v596_v33  ;;  %v615_v42 = vmul.f32 %v1986_v1, %v597_v25 }
 0x139   : > { %1535 = vmatmul.mubr.bf16.vlgmr.msra.gmra.mrb[16].mxu0 %v671_v36  ;;  %v659_v43 = vsel %vm627_vm8, %v611_v16, %v643_v37  ;;  %vm629_vm10 = vcmp.ge.f32.partialorder %v613_v38, 0.0  ;;  %v645_v44 = vmul.f32 0.01, %v613_v38  ;;  %v616_v46 = vmul.f32 %v1986_v1, %v598_v31 }
 0x13a   : > { %v672_v47 = vpack.c.bf16 %v659_v43, %v658_v22  ;;  %v660_v49 = vsel %vm628_vm9, %v612_v18, %v644_v39  ;;  %vm630_vm11 = vcmp.ge.f32.partialorder %v614_v40, 0.0  ;;  %vm631_vm12 = vcmp.ge.f32.partialorder %v615_v42, 0.0 }
 0x13b   : > { %v661_v50 = vsel %vm629_vm10, %v613_v38, %v645_v44  ;;  %v646_v27 = vmul.f32 0.01, %v614_v40  ;;  %v647_v51 = vmul.f32 0.01, %v615_v42  ;;  %v617_v52 = vmul.f32 %v1986_v1, %v599_v45  ;;  %v1645_v45 = vld [vmem:[%s2352_s5 + $0x10] sm:$0xff]  }
 0x13c   : > { %1538 = vmatprep.mubr.bf16.mxu0 %v672_v47  ;;  %v673_v54 = vpack.c.bf16 %v661_v50, %v660_v49  ;;  %vm632_vm13 = vcmp.ge.f32.partialorder %v616_v46, 0.0  ;;  %v648_v55 = vmul.f32 0.01, %v616_v46  ;;  %v618_v56 = vmul.f32 %v1986_v1, %v600_v53  ;;  %1554 = vmatprep.subr.bf16.mxu1 %v1645_v45  ;;  %v1647_v53 = vld [vmem:[%s2352_s5 + $0x20] sm:$0xff]  }
 0x13d   : > { %v662_v57 = vsel %vm630_vm11, %v614_v40, %v646_v27  ;;  %v663_v58 = vsel %vm631_vm12, %v615_v42, %v647_v51  ;;  %vm633_vm14 = vcmp.ge.f32.partialorder %v617_v52, 0.0  ;;  %v649_v60 = vmul.f32 0.01, %v617_v52  ;;  %1555 = vmatpush3.bf16.msra.mxu1 %v1645_v45 }
 0x13e   : > { %v674_v62 = vpack.c.bf16 %v663_v58, %v662_v57  ;;  %v664_v63 = vsel %vm632_vm13, %v616_v46, %v648_v55  ;;  %vm634_vm15 = vcmp.ge.f32.partialorder %v618_v56, 0.0  ;;  %vm635_vm0 = vcmp.ge.f32.partialorder %v1989_v9, 0.0  ;;  %1556 = vmatprep.subr.bf16.mxu1 %v1646_v12 }
 0x13f   : > { %v665_v0 = vsel %vm633_vm14, %v617_v52, %v649_v60  ;;  %v650_v2 = vmul.f32 0.01, %v618_v56  ;;  %v651_v3 = vmul.f32 0.01, %v1989_v9  ;;  %v620_v5 = vmul.f32 %v1986_v1, %v602_v41  ;;  %v1648_v41 = vld [vmem:[%s2352_s5 + $0x28] sm:$0xff]  }
 0x140   : > { %v675_v6 = vpack.c.bf16 %v665_v0, %v664_v63  ;;  %v621_v7 = vmul.f32 %v1986_v1, %v603_v48  ;;  %v1649_v48 = vld [vmem:[%s2352_s5 + $0x30] sm:$0xff]   ;;  %v1650_v1 = vld [vmem:[%s2352_s5 + $0x38] sm:$0xff]  }
 0x141   : > { %1539 = vmatmul.mubr.bf16.gmra.mrb[20].mxu0 %v673_v54  ;;  %v666_v8 = vsel %vm634_vm15, %v618_v56, %v650_v2  ;;  %v667_v10 = vsel %vm635_vm0, %v1989_v9, %v651_v3  ;;  %vm636_vm1 = vcmp.ge.f32.partialorder %v620_v5, 0.0  ;;  %v652_v11 = vmul.f32 0.01, %v620_v5  ;;  %1557 = vmatpush3.bf16.msra.mxu1 %v1646_v12 }
 0x142   : > { %1542 = vmatprep.mubr.bf16.mxu0 %v674_v62  ;;  %v676_v28 = vpack.c.bf16 %v667_v10, %v666_v8  ;;  %vm637_vm2 = vcmp.ge.f32.partialorder %v621_v7, 0.0  ;;  %v653_v33 = vmul.f32 0.01, %v621_v7  ;;  %1558 = vmatprep.subr.bf16.mxu1 %v1647_v53 }
 0x143   : > { %v668_v25 = vsel %vm636_vm1, %v620_v5, %v652_v11 }
 0x144   : > { %v669_v17 = vsel %vm637_vm2, %v621_v7, %v653_v33 }
 0x145   : > { %v677_v31 = vpack.c.bf16 %v669_v17, %v668_v25  ;;  %1559 = vmatpush3.bf16.msra.mxu1 %v1647_v53 }
 0x146   : > { %1560 = vmatprep.subr.bf16.mxu1 %v1648_v41 }
 0x149   : > { %1543 = vmatmul.mubr.bf16.gmra.mrb[24].mxu0 %v675_v6  ;;  %1561 = vmatpush3.bf16.msra.mxu1 %v1648_v41 }
 0x14a   : > { %1546 = vmatprep.mubr.bf16.mxu0 %v676_v28  ;;  %1562 = vmatprep.subr.bf16.mxu1 %v1649_v48 }
 0x14d   : > { %1563 = vmatpush3.bf16.msra.mxu1 %v1649_v48 }
 0x14e   : > { %1564 = vmatprep.subr.bf16.mxu1 %v1650_v1 }
 0x151   : > { %1547 = vmatmul.mubr.bf16.gmra.mrb[28].mxu0 %v677_v31  ;;  %1565 = vmatpush3.bf16.msra.mxu1 %v1650_v1 }
 0x20c   : > { %v2039_v9 = vpop.f32.mrb[16].mxu0 }
 0x20d   : > { %v2041_v61 = vpop.f32.mrb[17].mxu0  ;;  %v863_v18 = vmul.f32 %v2039_v9, %v2039_v9 }
 0x20e   : > { %v2043_v4 = vpop.f32.mrb[18].mxu0  ;;  %v861_v14 = vmul.f32 %v2041_v61, %v2041_v61 }
 0x20f   : > { %v2045_v13 = vpop.f32.mrb[19].mxu0  ;;  %v864_v21 = vmul.f32 %v2043_v4, %v2043_v4 }
 0x210   : > { %v839_v15 = vadd.f32 %v2045_v13, %v2041_v61  ;;  %v862_v16 = vmul.f32 %v2045_v13, %v2045_v13 }
 0x212   : > { %v840_v19 = vadd.f32 %v2039_v9, %v839_v15  ;;  %v877_v20 = vadd.f32 %v862_v16, %v861_v14 }
 0x214   : > { %v878_v23 = vadd.f32 %v877_v20, %v863_v18  ;;  %v2058_v24 = vpop.f32.mrb[20].mxu0  ;;  %v841_v29 = vadd.f32 %v2043_v4, %v840_v19 }
 0x215   : > { %v2061_v30 = vpop.f32.mrb[21].mxu0  ;;  %v867_v40 = vmul.f32 %v2058_v24, %v2058_v24 }
 0x216   : > { %v842_v32 = vadd.f32 %v841_v29, %v2061_v30  ;;  %v865_v34 = vmul.f32 %v2061_v30, %v2061_v30  ;;  %v879_v35 = vadd.f32 %v878_v23, %v864_v21  ;;  %v2066_v36 = vpop.f32.mrb[22].mxu0 }
 0x217   : > { %v2068_v37 = vpop.f32.mrb[23].mxu0  ;;  %v868_v44 = vmul.f32 %v2066_v36, %v2066_v36 }
 0x218   : > { %v880_v38 = vadd.f32 %v879_v35, %v865_v34  ;;  %v843_v22 = vadd.f32 %v842_v32, %v2068_v37  ;;  %v866_v39 = vmul.f32 %v2068_v37, %v2068_v37 }
 0x21a   : > { %v844_v42 = vadd.f32 %v2058_v24, %v843_v22  ;;  %v881_v43 = vadd.f32 %v880_v38, %v866_v39 }
 0x21c   : > { %v882_v46 = vadd.f32 %v881_v43, %v867_v40  ;;  %v2078_v47 = vpop.f32.mrb[24].mxu0  ;;  %v845_v49 = vadd.f32 %v2066_v36, %v844_v42 }
 0x21d   : > { %v2081_v50 = vpop.f32.mrb[25].mxu0  ;;  %v871_v60 = vmul.f32 %v2078_v47, %v2078_v47 }
 0x21e   : > { %v846_v27 = vadd.f32 %v845_v49, %v2081_v50  ;;  %v869_v51 = vmul.f32 %v2081_v50, %v2081_v50  ;;  %v883_v52 = vadd.f32 %v882_v46, %v868_v44  ;;  %v2086_v54 = vpop.f32.mrb[26].mxu0 }
 0x21f   : > { %v2088_v55 = vpop.f32.mrb[27].mxu0  ;;  %v872_v0 = vmul.f32 %v2086_v54, %v2086_v54 }
 0x220   : > { %v884_v56 = vadd.f32 %v883_v52, %v869_v51  ;;  %v847_v57 = vadd.f32 %v846_v27, %v2088_v55  ;;  %v870_v58 = vmul.f32 %v2088_v55, %v2088_v55 }
 0x222   : > { %v848_v62 = vadd.f32 %v2078_v47, %v847_v57  ;;  %v885_v63 = vadd.f32 %v884_v56, %v870_v58 }
 0x224   : > { %v886_v2 = vadd.f32 %v885_v63, %v871_v60  ;;  %v2098_v3 = vpop.f32.mrb[28].mxu0  ;;  %v849_v5 = vadd.f32 %v2086_v54, %v848_v62 }
 0x225   : > { %v2101_v6 = vpop.f32.mrb[29].mxu0  ;;  %v875_v31 = vmul.f32 %v2098_v3, %v2098_v3 }
 0x226   : > { %v850_v7 = vadd.f32 %v849_v5, %v2101_v6  ;;  %v873_v8 = vmul.f32 %v2101_v6, %v2101_v6  ;;  %v887_v10 = vadd.f32 %v886_v2, %v872_v0  ;;  %v2106_v11 = vpop.f32.mrb[30].mxu0 }
 0x227   : > { %v827_v28 = vpop.f32.mrb[31].mxu0  ;;  %v876_v45 = vmul.f32 %v2106_v11, %v2106_v11 }
 0x228   : > { %v888_v33 = vadd.f32 %v887_v10, %v873_v8  ;;  %v851_v25 = vadd.f32 %v850_v7, %v827_v28  ;;  %v874_v17 = vmul.f32 %v827_v28, %v827_v28 }
 0x22a   : > { %v852_v26 = vadd.f32 %v2098_v3, %v851_v25  ;;  %v889_v59 = vadd.f32 %v888_v33, %v874_v17 }
 0x22c   : > { %v853_v12 = vadd.f32 %v2106_v11, %v852_v26  ;;  %v890_v53 = vadd.f32 %v889_v59, %v875_v31 }
 0x22e   : > { %v854_v41 = vrot.slane %v853_v12, 4  ;;  %v891_v48 = vadd.f32 %v890_v53, %v876_v45 }
 0x230   : > { %v855_v1 = vadd.f32 %v854_v41, %v853_v12  ;;  %v892_v14 = vrot.slane %v891_v48, 4 }
 0x232   : > { %v856_v15 = vrot.slane %v855_v1, 2  ;;  %v893_v16 = vadd.f32 %v892_v14, %v891_v48 }
 0x234   : > { %v857_v18 = vadd.f32 %v856_v15, %v855_v1  ;;  %v894_v19 = vrot.slane %v893_v16, 2 }
 0x236   : > { %v858_v20 = vrot.slane %v857_v18, 1  ;;  %v895_v21 = vadd.f32 %v894_v19, %v893_v16 }
 0x238   : > { %v859_v23 = vadd.f32 %v858_v20, %v857_v18  ;;  %v896_v29 = vrot.slane %v895_v21, 1 }
 0x23a   : > { %v2114_v32 = vmul.f32 0.0078125, %v859_v23  ;;  %v897_v34 = vadd.f32 %v896_v29, %v895_v21 }
 0x23c   : > { %v898_v35 = vmul.f32 0.0078125, %v897_v34  ;;  %v899_v38 = vmul.f32 %v2114_v32, %v2114_v32  ;;  %v914_v22 = vsub.f32 %v827_v28, %v2114_v32  ;;  %v901_v39 = vsub.f32 %v2041_v61, %v2114_v32 }
 0x23d   : > { %v902_v40 = vsub.f32 %v2045_v13, %v2114_v32  ;;  %v903_v42 = vsub.f32 %v2039_v9, %v2114_v32  ;;  %v904_v43 = vsub.f32 %v2043_v4, %v2114_v32  ;;  %v905_v44 = vsub.f32 %v2061_v30, %v2114_v32 }
 0x23e   : > { %v900_v46 = vsub.f32 %v898_v35, %v899_v38  ;;  %v906_v49 = vsub.f32 %v2068_v37, %v2114_v32  ;;  %v907_v27 = vsub.f32 %v2058_v24, %v2114_v32  ;;  %v908_v61 = vsub.f32 %v2066_v36, %v2114_v32 }
 0x23f   : > { %v909_v13 = vsub.f32 %v2081_v50, %v2114_v32  ;;  %v910_v9 = vsub.f32 %v2088_v55, %v2114_v32  ;;  %v911_v4 = vsub.f32 %v2078_v47, %v2114_v32  ;;  %v912_v30 = vsub.f32 %v2086_v54, %v2114_v32 }
 0x240   : > { %v917_v51 = vadd.f32 1e-05, %v900_v46  ;;  %v913_v37 = vsub.f32 %v2101_v6, %v2114_v32  ;;  %v915_v24 = vsub.f32 %v2098_v3, %v2114_v32  ;;  %v916_v36 = vsub.f32 %v2106_v11, %v2114_v32 }
 0x242   : > { %1653 = vrsqrt.f32 %v917_v51 }
 0x24c   : > { %v2149_v50 = vpop.eup %1653 }
 0x24d   : > { %v2152_v52 = vmul.f32 %v2149_v50, %v914_v22  ;;  %v919_v47 = vmul.f32 %v2149_v50, %v901_v39  ;;  %v920_v54 = vmul.f32 %v2149_v50, %v902_v40  ;;  %v921_v55 = vmul.f32 %v2149_v50, %v903_v42 }
 0x24e   : > { %v922_v56 = vmul.f32 %v2149_v50, %v904_v43  ;;  %v923_v57 = vmul.f32 %v2149_v50, %v905_v44  ;;  %v924_v58 = vmul.f32 %v2149_v50, %v906_v49  ;;  %v925_v60 = vmul.f32 %v2149_v50, %v907_v27 }
 0x24f   : > { %v964_v62 = vmul.f32 0.01, %v2152_v52  ;;  %vm935_vm3 = vcmp.ge.f32.partialorder %v919_v47, 0.0  ;;  %vm936_vm4 = vcmp.ge.f32.partialorder %v920_v54, 0.0  ;;  %v951_v63 = vmul.f32 0.01, %v919_v47 }
 0x250   : > { %v952_v0 = vmul.f32 0.01, %v920_v54  ;;  %vm937_vm5 = vcmp.ge.f32.partialorder %v921_v55, 0.0  ;;  %vm938_vm6 = vcmp.ge.f32.partialorder %v922_v56, 0.0  ;;  %v953_v2 = vmul.f32 0.01, %v921_v55 }
 0x251   : > { %v967_v5 = vsel %vm935_vm3, %v919_v47, %v951_v63  ;;  %v954_v6 = vmul.f32 0.01, %v922_v56  ;;  %vm939_vm7 = vcmp.ge.f32.partialorder %v923_v57, 0.0  ;;  %vm940_vm8 = vcmp.ge.f32.partialorder %v924_v58, 0.0 }
 0x252   : > { %v968_v7 = vsel %vm936_vm4, %v920_v54, %v952_v0  ;;  %v969_v8 = vsel %vm937_vm5, %v921_v55, %v953_v2  ;;  %v955_v10 = vmul.f32 0.01, %v923_v57  ;;  %v956_v28 = vmul.f32 0.01, %v924_v58 }
 0x253   : > { %v983_v33 = vpack.c.bf16 %v968_v7, %v967_v5  ;;  %v970_v25 = vsel %vm938_vm6, %v922_v56, %v954_v6  ;;  %v926_v17 = vmul.f32 %v2149_v50, %v908_v61  ;;  %vm941_vm9 = vcmp.ge.f32.partialorder %v925_v60, 0.0 }
 0x254   : > { %v984_v31 = vpack.c.bf16 %v970_v25, %v969_v8  ;;  %v971_v26 = vsel %vm939_vm7, %v923_v57, %v955_v10  ;;  %v972_v59 = vsel %vm940_vm8, %v924_v58, %v956_v28  ;;  %v957_v45 = vmul.f32 0.01, %v925_v60 }
 0x255   : > { %1566 = vmatprep.mubr.bf16.mxu1 %v983_v33  ;;  %v985_v12 = vpack.c.bf16 %v972_v59, %v971_v26  ;;  %vm942_vm10 = vcmp.ge.f32.partialorder %v926_v17, 0.0  ;;  %v958_v53 = vmul.f32 0.01, %v926_v17  ;;  %v927_v41 = vmul.f32 %v2149_v50, %v909_v13 }
 0x256   : > { %1567 = vmatmul.mubr.bf16.vlgmr.msra.gmra.mrb[4].mxu1 %v984_v31  ;;  %v973_v48 = vsel %vm941_vm9, %v925_v60, %v957_v45  ;;  %v928_v1 = vmul.f32 %v2149_v50, %v910_v9  ;;  %v929_v14 = vmul.f32 %v2149_v50, %v911_v4  ;;  %v930_v15 = vmul.f32 %v2149_v50, %v912_v30 }
 0x257   : > { %1570 = vmatprep.mubr.bf16.mxu1 %v985_v12  ;;  %v974_v16 = vsel %vm942_vm10, %v926_v17, %v958_v53  ;;  %vm943_vm11 = vcmp.ge.f32.partialorder %v927_v41, 0.0  ;;  %v959_v18 = vmul.f32 0.01, %v927_v41  ;;  %v931_v19 = vmul.f32 %v2149_v50, %v913_v37 }
 0x258   : > { %v986_v20 = vpack.c.bf16 %v974_v16, %v973_v48  ;;  %vm944_vm12 = vcmp.ge.f32.partialorder %v928_v1, 0.0  ;;  %v960_v21 = vmul.f32 0.01, %v928_v1  ;;  %vm945_vm13 = vcmp.ge.f32.partialorder %v929_v14, 0.0 }
 0x259   : > { %v975_v23 = vsel %vm943_vm11, %v927_v41, %v959_v18  ;;  %vm946_vm14 = vcmp.ge.f32.partialorder %v930_v15, 0.0  ;;  %v961_v29 = vmul.f32 0.01, %v929_v14  ;;  %v962_v34 = vmul.f32 0.01, %v930_v15 }
 0x25a   : > { %v976_v35 = vsel %vm944_vm12, %v928_v1, %v960_v21  ;;  %vm947_vm15 = vcmp.ge.f32.partialorder %v931_v19, 0.0  ;;  %vm948_vm0 = vcmp.ge.f32.partialorder %v2152_v52, 0.0  ;;  %v963_v38 = vmul.f32 0.01, %v931_v19 }
 0x25b   : > { %v987_v22 = vpack.c.bf16 %v976_v35, %v975_v23  ;;  %v977_v39 = vsel %vm945_vm13, %v929_v14, %v961_v29  ;;  %v978_v40 = vsel %vm946_vm14, %v930_v15, %v962_v34  ;;  %v980_v42 = vsel %vm948_vm0, %v2152_v52, %v964_v62 }
 0x25c   : > { %v988_v43 = vpack.c.bf16 %v978_v40, %v977_v39  ;;  %v979_v44 = vsel %vm947_vm15, %v931_v19, %v963_v38  ;;  %v933_v46 = vmul.f32 %v2149_v50, %v915_v24  ;;  %v934_v49 = vmul.f32 %v2149_v50, %v916_v36 }
 0x25d   : > { %v989_v27 = vpack.c.bf16 %v980_v42, %v979_v44 }
 0x25e   : > { %1571 = vmatmul.mubr.bf16.gmra.mrb[8].mxu1 %v986_v20  ;;  %vm949_vm1 = vcmp.ge.f32.partialorder %v933_v46, 0.0  ;;  %vm950_vm2 = vcmp.ge.f32.partialorder %v934_v49, 0.0  ;;  %v965_v61 = vmul.f32 0.01, %v933_v46  ;;  %v966_v13 = vmul.f32 0.01, %v934_v49 }
 0x25f   : > { %1574 = vmatprep.mubr.bf16.mxu1 %v987_v22 }
 0x260   : > { %v981_v9 = vsel %vm949_vm1, %v933_v46, %v965_v61  ;;  %v982_v4 = vsel %vm950_vm2, %v934_v49, %v966_v13 }
 0x261   : > { %v990_v30 = vpack.c.bf16 %v982_v4, %v981_v9 }
 0x266   : > { %1575 = vmatmul.mubr.bf16.gmra.mrb[12].mxu1 %v988_v43 }
 0x267   : > { %1578 = vmatprep.mubr.bf16.mxu1 %v989_v27 }
 0x26e   : > { %1579 = vmatmul.mubr.bf16.gmra.mrb[16].mxu1 %v990_v30 }
 0x329   : > { %v2178_v3 = vpop.f32.mrb[4].mxu1 }
 0x32a   : > { %v2180_v51 = vpop.f32.mrb[5].mxu1  ;;  %v1176_v50 = vmul.f32 %v2178_v3, %v2178_v3 }
 0x32b   : > { %v2182_v11 = vpop.f32.mrb[6].mxu1  ;;  %v1174_v37 = vmul.f32 %v2180_v51, %v2180_v51 }
 0x32c   : > { %v2184_v32 = vpop.f32.mrb[7].mxu1  ;;  %v1177_v54 = vmul.f32 %v2182_v11, %v2182_v11 }
 0x32d   : > { %v1152_v24 = vadd.f32 %v2184_v32, %v2180_v51  ;;  %v1175_v36 = vmul.f32 %v2184_v32, %v2184_v32 }
 0x32f   : > { %v1153_v52 = vadd.f32 %v2178_v3, %v1152_v24  ;;  %v1190_v47 = vadd.f32 %v1175_v36, %v1174_v37 }
 0x331   : > { %v1191_v55 = vadd.f32 %v1190_v47, %v1176_v50  ;;  %v2197_v56 = vpop.f32.mrb[8].mxu1  ;;  %v1154_v57 = vadd.f32 %v2182_v11, %v1153_v52 }
 0x332   : > { %v2200_v58 = vpop.f32.mrb[9].mxu1  ;;  %v1180_v8 = vmul.f32 %v2197_v56, %v2197_v56 }
 0x333   : > { %v1155_v60 = vadd.f32 %v1154_v57, %v2200_v58  ;;  %v1178_v62 = vmul.f32 %v2200_v58, %v2200_v58  ;;  %v1192_v63 = vadd.f32 %v1191_v55, %v1177_v54  ;;  %v2205_v0 = vpop.f32.mrb[10].mxu1 }
 0x334   : > { %v2207_v2 = vpop.f32.mrb[11].mxu1  ;;  %v1181_v33 = vmul.f32 %v2205_v0, %v2205_v0 }
 0x335   : > { %v1193_v5 = vadd.f32 %v1192_v63, %v1178_v62  ;;  %v1156_v6 = vadd.f32 %v1155_v60, %v2207_v2  ;;  %v1179_v7 = vmul.f32 %v2207_v2, %v2207_v2 }
 0x337   : > { %v1157_v10 = vadd.f32 %v2197_v56, %v1156_v6  ;;  %v1194_v28 = vadd.f32 %v1193_v5, %v1179_v7 }
 0x339   : > { %v1195_v25 = vadd.f32 %v1194_v28, %v1180_v8  ;;  %v2217_v17 = vpop.f32.mrb[12].mxu1  ;;  %v1158_v31 = vadd.f32 %v2205_v0, %v1157_v10 }
 0x33a   : > { %v2220_v26 = vpop.f32.mrb[13].mxu1  ;;  %v1184_v15 = vmul.f32 %v2217_v17, %v2217_v17 }
 0x33b   : > { %v1159_v59 = vadd.f32 %v1158_v31, %v2220_v26  ;;  %v1182_v45 = vmul.f32 %v2220_v26, %v2220_v26  ;;  %v1196_v12 = vadd.f32 %v1195_v25, %v1181_v33  ;;  %v2225_v53 = vpop.f32.mrb[14].mxu1 }
 0x33c   : > { %v2227_v41 = vpop.f32.mrb[15].mxu1  ;;  %v1185_v19 = vmul.f32 %v2225_v53, %v2225_v53 }
 0x33d   : > { %v1197_v48 = vadd.f32 %v1196_v12, %v1182_v45  ;;  %v1160_v1 = vadd.f32 %v1159_v59, %v2227_v41  ;;  %v1183_v14 = vmul.f32 %v2227_v41, %v2227_v41 }
 0x33f   : > { %v1161_v16 = vadd.f32 %v2217_v17, %v1160_v1  ;;  %v1198_v18 = vadd.f32 %v1197_v48, %v1183_v14 }
 0x341   : > { %v1199_v20 = vadd.f32 %v1198_v18, %v1184_v15  ;;  %v2237_v21 = vpop.f32.mrb[16].mxu1  ;;  %v1162_v23 = vadd.f32 %v2225_v53, %v1161_v16 }
 0x342   : > { %v2240_v29 = vpop.f32.mrb[17].mxu1  ;;  %v1188_v44 = vmul.f32 %v2237_v21, %v2237_v21 }
 0x343   : > { %v1163_v34 = vadd.f32 %v1162_v23, %v2240_v29  ;;  %v1186_v35 = vmul.f32 %v2240_v29, %v2240_v29  ;;  %v1200_v38 = vadd.f32 %v1199_v20, %v1185_v19  ;;  %v1581_v22 = vpop.f32.mrb[18].mxu1 }
 0x344   : > { %v1140_v39 = vpop.f32.mrb[19].mxu1  ;;  %v1189_v27 = vmul.f32 %v1581_v22, %v1581_v22 }
 0x345   : > { %v1201_v40 = vadd.f32 %v1200_v38, %v1186_v35  ;;  %v1164_v42 = vadd.f32 %v1163_v34, %v1140_v39  ;;  %v1187_v43 = vmul.f32 %v1140_v39, %v1140_v39 }
 0x347   : > { %v1165_v46 = vadd.f32 %v2237_v21, %v1164_v42  ;;  %v1202_v49 = vadd.f32 %v1201_v40, %v1187_v43 }
 0x349   : > { %v1166_v61 = vadd.f32 %v1581_v22, %v1165_v46  ;;  %v1203_v13 = vadd.f32 %v1202_v49, %v1188_v44 }
 0x34b   : > { %v1167_v9 = vrot.slane %v1166_v61, 4  ;;  %v1204_v4 = vadd.f32 %v1203_v13, %v1189_v27 }
 0x34d   : > { %v1168_v30 = vadd.f32 %v1167_v9, %v1166_v61  ;;  %v1205_v37 = vrot.slane %v1204_v4, 4 }
 0x34f   : > { %v1169_v24 = vrot.slane %v1168_v30, 2  ;;  %v1206_v36 = vadd.f32 %v1205_v37, %v1204_v4 }
 0x351   : > { %v1170_v50 = vadd.f32 %v1169_v24, %v1168_v30  ;;  %v1207_v52 = vrot.slane %v1206_v36, 2 }
 0x353   : > { %v1171_v47 = vrot.slane %v1170_v50, 1  ;;  %v1208_v54 = vadd.f32 %v1207_v52, %v1206_v36 }
 0x355   : > { %v1172_v55 = vadd.f32 %v1171_v47, %v1170_v50  ;;  %v1209_v57 = vrot.slane %v1208_v54, 1 }
 0x357   : > { %v2248_v60 = vmul.f32 0.0078125, %v1172_v55  ;;  %v1210_v62 = vadd.f32 %v1209_v57, %v1208_v54 }
 0x359   : > { %v1211_v63 = vmul.f32 0.0078125, %v1210_v62  ;;  %v1212_v5 = vmul.f32 %v2248_v60, %v2248_v60  ;;  %v1215_v6 = vsub.f32 %v2184_v32, %v2248_v60  ;;  %v1217_v7 = vsub.f32 %v2182_v11, %v2248_v60 }
 0x35a   : > { %v1219_v8 = vsub.f32 %v2207_v2, %v2248_v60  ;;  %v1221_v10 = vsub.f32 %v2205_v0, %v2248_v60  ;;  %v1223_v28 = vsub.f32 %v2227_v41, %v2248_v60  ;;  %v1225_v33 = vsub.f32 %v2225_v53, %v2248_v60 }
 0x35b   : > { %v1213_v25 = vsub.f32 %v1211_v63, %v1212_v5  ;;  %v1227_v31 = vsub.f32 %v1140_v39, %v2248_v60  ;;  %v1229_v32 = vsub.f32 %v1581_v22, %v2248_v60  ;;  %v1214_v11 = vsub.f32 %v2180_v51, %v2248_v60 }
 0x35c   : > { %v1216_v2 = vsub.f32 %v2178_v3, %v2248_v60  ;;  %v1218_v0 = vsub.f32 %v2200_v58, %v2248_v60  ;;  %v1220_v59 = vsub.f32 %v2197_v56, %v2248_v60  ;;  %v1222_v45 = vsub.f32 %v2220_v26, %v2248_v60 }
 0x35d   : > { %v1230_v12 = vadd.f32 1e-05, %v1213_v25  ;;  %v1224_v53 = vsub.f32 %v2217_v17, %v2248_v60  ;;  %v1226_v41 = vsub.f32 %v2240_v29, %v2248_v60  ;;  %v1228_v51 = vsub.f32 %v2237_v21, %v2248_v60 }
 0x35f   : > { %1655 = vrsqrt.f32 %v1230_v12 }
 0x369   : > { %v1656_v3 = vpop.eup %1655 }
 0x36a   : > { %v1233_v48 = vmul.f32 %v1656_v3, %v1215_v6  ;;  %v1235_v58 = vmul.f32 %v1656_v3, %v1217_v7  ;;  %v1237_v1 = vmul.f32 %v1656_v3, %v1219_v8  ;;  %v1239_v14 = vmul.f32 %v1656_v3, %v1221_v10 }
 0x36b   : > { %v1241_v56 = vmul.f32 %v1656_v3, %v1223_v28  ;;  %v1243_v15 = vmul.f32 %v1656_v3, %v1225_v33  ;;  %v1245_v16 = vmul.f32 %v1656_v3, %v1227_v31  ;;  %v1247_v26 = vmul.f32 %v1656_v3, %v1229_v32 }
 0x36c   : > { %vm1249_vm3 = vcmp.ge.f32.partialorder %v1233_v48, 0.0  ;;  %vm1251_vm4 = vcmp.ge.f32.partialorder %v1235_v58, 0.0  ;;  %vm1253_vm5 = vcmp.ge.f32.partialorder %v1237_v1, 0.0  ;;  %vm1255_vm6 = vcmp.ge.f32.partialorder %v1239_v14, 0.0 }
 0x36d   : > { %vm1257_vm7 = vcmp.ge.f32.partialorder %v1241_v56, 0.0  ;;  %vm1259_vm8 = vcmp.ge.f32.partialorder %v1243_v15, 0.0  ;;  %v1265_v17 = vmul.f32 0.01, %v1233_v48  ;;  %v1267_v18 = vmul.f32 0.01, %v1235_v58 }
 0x36e   : > { %v1269_v19 = vmul.f32 0.01, %v1237_v1  ;;  %v1232_v20 = vmul.f32 %v1656_v3, %v1214_v11  ;;  %v1271_v21 = vmul.f32 0.01, %v1239_v14  ;;  %v1273_v23 = vmul.f32 0.01, %v1241_v56 }
 0x36f   : > { %v1275_v29 = vmul.f32 0.01, %v1243_v15  ;;  %v1234_v34 = vmul.f32 %v1656_v3, %v1216_v2  ;;  %vm1261_vm9 = vcmp.ge.f32.partialorder %v1245_v16, 0.0  ;;  %vm1263_vm10 = vcmp.ge.f32.partialorder %v1247_v26, 0.0 }
 0x370   : > { %v1281_v35 = vsel %vm1249_vm3, %v1233_v48, %v1265_v17  ;;  %v1283_v38 = vsel %vm1251_vm4, %v1235_v58, %v1267_v18  ;;  %v1277_v22 = vmul.f32 0.01, %v1245_v16  ;;  %v1279_v39 = vmul.f32 0.01, %v1247_v26 }
 0x371   : > { %v1285_v40 = vsel %vm1253_vm5, %v1237_v1, %v1269_v19  ;;  %v1287_v42 = vsel %vm1255_vm6, %v1239_v14, %v1271_v21  ;;  %v1289_v43 = vsel %vm1257_vm7, %v1241_v56, %v1273_v23  ;;  %v1291_v44 = vsel %vm1259_vm8, %v1243_v15, %v1275_v29 }
 0x372   : > { %v1303_v46 = vmax.f32 %v1281_v35, %v1285_v40  ;;  %v1304_v49 = vmax.f32 %v1283_v38, %v1287_v42  ;;  %v1236_v27 = vmul.f32 %v1656_v3, %v1218_v0  ;;  %v1238_v61 = vmul.f32 %v1656_v3, %v1220_v59 }
 0x373   : > { %v1240_v13 = vmul.f32 %v1656_v3, %v1222_v45  ;;  %v1242_v9 = vmul.f32 %v1656_v3, %v1224_v53  ;;  %v1244_v37 = vmul.f32 %v1656_v3, %v1226_v41  ;;  %v1246_v24 = vmul.f32 %v1656_v3, %v1228_v51 }
 0x374   : > { %v1305_v4 = vmax.f32 %v1303_v46, %v1289_v43  ;;  %v1306_v30 = vmax.f32 %v1304_v49, %v1291_v44  ;;  %v1293_v36 = vsel %vm1261_vm9, %v1245_v16, %v1277_v22  ;;  %v1295_v50 = vsel %vm1263_vm10, %v1247_v26, %v1279_v39 }
 0x375   : > { %vm1248_vm11 = vcmp.ge.f32.partialorder %v1232_v20, 0.0  ;;  %vm1250_vm12 = vcmp.ge.f32.partialorder %v1234_v34, 0.0  ;;  %vm1252_vm13 = vcmp.ge.f32.partialorder %v1236_v27, 0.0  ;;  %vm1254_vm14 = vcmp.ge.f32.partialorder %v1238_v61, 0.0 }
 0x376   : > { %v1307_v52 = vmax.f32 %v1305_v4, %v1293_v36  ;;  %v1308_v47 = vmax.f32 %v1306_v30, %v1295_v50  ;;  %v1264_v54 = vmul.f32 0.01, %v1232_v20  ;;  %v1266_v55 = vmul.f32 0.01, %v1234_v34 }
 0x377   : > { %v1268_v60 = vmul.f32 0.01, %v1236_v27  ;;  %v1270_v62 = vmul.f32 0.01, %v1238_v61  ;;  %v1272_v63 = vmul.f32 0.01, %v1240_v13 }
 0x378   : > { %v1309_v57 = vmax.f32 %v1307_v52, %v1308_v47  ;;  %vm1256_vm15 = vcmp.ge.f32.partialorder %v1240_v13, 0.0  ;;  %vm1258_vm0 = vcmp.ge.f32.partialorder %v1242_v9, 0.0  ;;  %v1274_v5 = vmul.f32 0.01, %v1242_v9 }
 0x379   : > { %v1280_v6 = vsel %vm1248_vm11, %v1232_v20, %v1264_v54  ;;  %v1276_v7 = vmul.f32 0.01, %v1244_v37  ;;  %v1282_v8 = vsel %vm1250_vm12, %v1234_v34, %v1266_v55  ;;  %v1284_v10 = vsel %vm1252_vm13, %v1236_v27, %v1268_v60 }
 0x37a   : > { %v1286_v28 = vsel %vm1254_vm14, %v1238_v61, %v1270_v62  ;;  %1311 = vst [vmem:[%s259_s11 + $0x8] sm:$0xff] %v1309_v57  ;;  %vm1260_vm1 = vcmp.ge.f32.partialorder %v1244_v37, 0.0  ;;  %v1278_v33 = vmul.f32 0.01, %v1246_v24  ;;  %v1296_v25 = vmax.f32 %v1280_v6, %v1284_v10 }
 0x37b   : > { %vm1262_vm2 = vcmp.ge.f32.partialorder %v1246_v24, 0.0  ;;  %v1288_v31 = vsel %vm1256_vm15, %v1240_v13, %v1272_v63  ;;  %v1297_v32 = vmax.f32 %v1282_v8, %v1286_v28  ;;  %v1290_v11 = vsel %vm1258_vm0, %v1242_v9, %v1274_v5 }
 0x37c   : > { %v1298_v2 = vmax.f32 %v1296_v25, %v1288_v31  ;;  %v1292_v0 = vsel %vm1260_vm1, %v1244_v37, %v1276_v7  ;;  %v1294_v45 = vsel %vm1262_vm2, %v1246_v24, %v1278_v33 }
 0x37d   : > { %v1299_v59 = vmax.f32 %v1297_v32, %v1290_v11 }
 0x37e   : > { %v1300_v12 = vmax.f32 %v1298_v2, %v1292_v0 }
 0x37f   : > { %v1301_v53 = vmax.f32 %v1299_v59, %v1294_v45 }
 0x381   : > { %v1302_v41 = vmax.f32 %v1300_v12, %v1301_v53 }
 0x383   : > { %1310 = vst [vmem:[%s259_s11] sm:$0xff] %v1302_v41 }
 0x384   : > { %1670 = shalt.err (!%p1667_p3)
}
 0x385   : > { %s1671_s26 = scalar_lea.hbm %s2300_s16, 256  ;;  %s1675_s9 = scalar_lea.hbm %s2353_s6, 512 }
 0x386   : > { %p1672_p4 = scmp.ne.s32.totalorder %s2300_s16, %s1671_s26  ;;  %p1676_p9 = scmp.lt.u32.totalorder %s2300_s16, %s2353_s6 }
 0x387   : > { %p1677_p10 = scmp.lt.u32.totalorder %s1675_s9, %s1671_s26  ;;  %p1679_p12 = scmp.lt.u32.totalorder %s1671_s26, %s2300_s16 }
 0x388   : > { %p1673_p7 = pnand %p1672_p4, %p1799_p5 }
 0x389   : > { %p1678_p11 = por %p1677_p10, %p1676_p9 }
 0x38a   : > { %p1674_p8 = pneg %p1673_p7 }
 0x38b   : > { %p1680_p13 = por %p1679_p12, %p1678_p11 }
 0x38d   : > { %p1681_p0 = pnand %p1680_p13, %p1674_p8 }
 0x38f   : > { %1684 = shalt.err (!%p1681_p0)
}
 0x390   : > { %s1724_s12 = smov 128   ;;  %s1725_s14 = smov 8  }
 0x391   : > { %1583 = dma.vmem_to_hbm [thread:$0]  (%p1799_p5), %s2302_s13, 256, %s2300_s16, %s2306_s17, %s1724_s12, %s1724_s12, %s1725_s14  }
 0x392 PF: > { %p1589_p1 = scmp.ge.s32.totalorder %s1719_s24, 2  ;;  %s1341_s15 = sand.u32 1, %s1707_s21  }
 0x393   : > { %s1342_s25 = scalar_lea.sflag [#allocation3], %s1341_s15 }
 0x394   : > { %p1586_p2 = pnand %p1589_p1, %p1803_p6 }
 0x396   : > { %1702 = dma.done.wait (!%p1586_p2), %s1342_s25, 256  }
 0x397   : > { %1704 = vsyncadd (!%p1586_p2), %s1342_s25, 4294967040  ;;  %p16_p3 = scmp.ge.s32.totalorder %s1786_s27, 4   ;;  %s2356_s21 = smov %s1711_s22 }
 0x398   : > { %s2357_s22 = smov %s1715_s23  ;;  %s2358_s23 = smov %s1797_s30 }
 0x399   : > { %s2359_s24 = smov %s1786_s27  ;;  %18 = sbr.rel (!%p16_p3) target bundleno = 3 (0x3), region = 82 }
 0x3a0   :  { %1347 = vsyncpa [#allocation3], 1 }
 0x3a1   :  { %1349 = vsyncpa [#allocation3 + $0x1], 1 }

</bundles_post_ra>
